<compile_context>
chip_gen: v5e
topology: v5e:2x2
jax: 0.10.0
libtpu: 0.0.40
codegen_flags: <defaults>
</compile_context>

<pallas_src>
import functools

import jax
import jax.numpy as jnp
from jax.experimental import pallas as pl
from jax.experimental.pallas import tpu as pltpu


def _ce_kernel(col_ref, logits_ref, labels_ref, out_ref, *, pad_id, n_rows,
               tile_n):
    i = pl.program_id(0)

    x = logits_ref[...]                               # (tile_n, V), native dtype
    lab = labels_ref[...]                             # (tile_n, 1) int32
    col = col_ref[...]                                # (1, V) int32, resident

    # Validity of each row: inside the real row range AND not the pad id.
    row = i * tile_n + jax.lax.broadcasted_iota(jnp.int32, (tile_n, 1), 0)
    valid = jnp.logical_and(row < n_rows, lab != pad_id)

    # Row max and target gather in the input dtype (bf16-friendly on v6e/v7x).
    m = jnp.max(x, axis=-1, keepdims=True).astype(jnp.float32)
    sel = jnp.where(col == lab, x, jnp.array(0, dtype=x.dtype))
    tgt = jnp.sum(sel, axis=-1, keepdims=True).astype(jnp.float32)

    # Numerically stable log-sum-exp in f32.
    x32 = x.astype(jnp.float32)
    lse = m + jnp.log(jnp.sum(jnp.exp(x32 - m), axis=-1, keepdims=True))

    # Per-row select (NOT multiply) blocks NaN/inf from garbage tail rows.
    per_row = jnp.where(valid, lse - tgt, 0.0)        # (tile_n, 1)
    cnt_row = jnp.where(valid, 1.0, 0.0)              # (tile_n, 1)

    s = jnp.sum(per_row)                              # scalar partial sum
    c = jnp.sum(cnt_row)                              # scalar partial count

    # Lane-dense (1, 1, 128) partial: lane 0 = sum, lane 1 = count, rest 0.
    lane = jax.lax.broadcasted_iota(jnp.int32, (1, 1, 128), 2)
    out_ref[...] = jnp.where(lane == 0, s, jnp.where(lane == 1, c, 0.0))


def _vmem_sizing():
    """Generation-aware scoped-VMEM limit and tile-picking budget (bytes)."""
    cap = 64 * 1024 * 1024  # conservative fallback: v7x physical VMEM per TC
    try:
        info = pltpu.get_tpu_info()
        cap = int(getattr(info, "vmem_capacity_bytes", cap)) or cap
    except Exception:
        pass
    limit = min((cap * 3) // 4, 100 * 1024 * 1024)   # 48 MiB v7x, 96 MiB v5e/v6e
    budget = (limit * 7) // 12                       # ~28 MiB v7x, ~56 MiB v5e/v6e
    return limit, budget


def _pick_tile_n(n_rows, v, itemsize, budget_bytes):
    """Largest row tile whose pipelined working set fits the VMEM budget."""
    # Live V-wide per-row arrays: 2x double-buffered input + in-dtype select
    # temp (3 * itemsize) + f32 upcast + f32 exp temporary (2 * 4 bytes).
    per_row_bytes = v * (3 * itemsize + 2 * 4)
    tile = budget_bytes // max(per_row_bytes, 1)
    tile = max(8, min(2048, (tile // 8) * 8))
    tile = min(tile, max(8, ((n_rows + 7) // 8) * 8))  # don't exceed row count
    return tile


def cross_entropy_loss(image_features, text_features, logits, labels,
                       logit_scale, *, pad_id, output_dict=True, tile_n=None):
    """Pallas implementation of the module's forward (caption_loss path).

    image_features / text_features / logit_scale are accepted for signature
    parity with the PyTorch module but are unused by this loss.
    """
    del image_features, text_features, logit_scale
    B, S, V = logits.shape
    n = B * S

    # Keep the input dtype (bf16 logits stream at half the HBM bytes).
    x = logits.reshape(n, V)
    y = labels.reshape(n, 1).astype(jnp.int32)
    col = jax.lax.broadcasted_iota(jnp.int32, (1, V), 1)   # resident lane iota

    vmem_limit, vmem_budget = _vmem_sizing()
    if tile_n is None:
        tile_n = _pick_tile_n(n, V, x.dtype.itemsize, vmem_budget)

    num_tiles = pl.cdiv(n, tile_n)

    partials = pl.pallas_call(
        functools.partial(_ce_kernel, pad_id=pad_id, n_rows=n, tile_n=tile_n),
        out_shape=jax.ShapeDtypeStruct((num_tiles, 1, 128), jnp.float32),
        grid_spec=pltpu.PrefetchScalarGridSpec(
            num_scalar_prefetch=0,
            grid=(num_tiles,),
            in_specs=[
                pl.BlockSpec((1, V), lambda i: (0, 0)),        # resident iota
                pl.BlockSpec((tile_n, V), lambda i: (i, 0)),   # logits rows
                pl.BlockSpec((tile_n, 1), lambda i: (i, 0)),   # labels rows
            ],
            out_specs=pl.BlockSpec((1, 1, 128), lambda i: (i, 0, 0)),
        ),
        compiler_params=pltpu.CompilerParams(
            dimension_semantics=("parallel",),   # megacore sharding on v7x
            vmem_limit_bytes=vmem_limit,
        ),
    )(col, x, y)

    total = jnp.sum(partials[:, 0, 0])
    count = jnp.sum(partials[:, 0, 1])
    # PyTorch returns NaN (0/0) when every target equals ignore_index; match it.
    caption_loss = total / count

    if output_dict:
        return {"caption_loss": caption_loss}
    return caption_loss


def _reference_loss(logits, labels, pad_id):
    # plain-JAX reference for sanity checking
    B, S, V = logits.shape
    x = logits.reshape(-1, V).astype(jnp.float32)
    y = labels.reshape(-1)
    lse = jax.scipy.special.logsumexp(x, axis=-1)
    tgt = jnp.take_along_axis(x, y[:, None], axis=-1)[:, 0]
    valid = (y != pad_id)
    per = (lse - tgt) * valid
    return jnp.sum(per) / jnp.sum(valid)


if __name__ == "__main__":
    key = jax.random.PRNGKey(0)
    k1, k2, k3, k4 = jax.random.split(key, 4)

    PAD_ID = 0
    B, S, V, D = 2, 8, 32, 16

    logits = jax.random.normal(k1, (B, S, V), dtype=jnp.float32)
    labels = jax.random.randint(k2, (B, S), 0, V, dtype=jnp.int32)
    # make a few positions the pad id so ignore_index is exercised
    labels = labels.at[0, :2].set(PAD_ID)

    image_features = jax.random.normal(k3, (B, D), dtype=jnp.float32)
    text_features = jax.random.normal(k4, (B, D), dtype=jnp.float32)
    logit_scale = jnp.float32(100.0)

    out = cross_entropy_loss(image_features, text_features, logits, labels,
                             logit_scale, pad_id=PAD_ID, output_dict=True)
    loss = jax.block_until_ready(out["caption_loss"])

    ref = _reference_loss(logits, labels, PAD_ID)
    assert jnp.allclose(loss, ref, rtol=1e-5, atol=1e-5), (loss, ref)
    print("KERNEL_OK")
</pallas_src>

<mosaic_0001>
module attributes {stable_mosaic.version = 11 : i64} {
  func.func @_ce_kernel(%arg0: i32, %arg1: memref<1x32xi32, #tpu.memory_space<vmem>>, %arg2: memref<16x32xf32, #tpu.memory_space<vmem>>, %arg3: memref<16x1xi32, #tpu.memory_space<vmem>>, %arg4: memref<1x1x128xf32, #tpu.memory_space<vmem>>) attributes {dimension_semantics = [#tpu.dimension_semantics<parallel>], iteration_bounds = array<i64: 1>, scalar_prefetch = 0 : i64, scratch_operands = 0 : i64, tpu.core_type = #tpu.core_type<tc>, window_params = [{pipeline_mode = #tpu.pipeline_mode<synchronous>, transform_indices = @transform_0, window_bounds = array<i64: 1, 32>}, {transform_indices = @transform_1, window_bounds = array<i64: 16, 32>}, {transform_indices = @transform_2, window_bounds = array<i64: 16, 1>}, {transform_indices = @transform_3, window_bounds = array<i64: 1, 1, 128>}]} {
    %c0 = arith.constant 0 : index
    %c0_0 = arith.constant 0 : index
    %0 = vector.load %arg2[%c0, %c0_0] : memref<16x32xf32, #tpu.memory_space<vmem>>, vector<16x32xf32>
    %c0_1 = arith.constant 0 : index
    %c0_2 = arith.constant 0 : index
    %1 = vector.load %arg3[%c0_1, %c0_2] : memref<16x1xi32, #tpu.memory_space<vmem>>, vector<16x1xi32>
    %c0_3 = arith.constant 0 : index
    %c0_4 = arith.constant 0 : index
    %2 = vector.load %arg1[%c0_3, %c0_4] : memref<1x32xi32, #tpu.memory_space<vmem>>, vector<1x32xi32>
    %c16_i32 = arith.constant 16 : i32
    %3 = arith.muli %arg0, %c16_i32 : i32
    %4 = tpu.iota {dimensions = array<i32: 0>} : vector<16x1xi32>
    %5 = vector.broadcast %3 : i32 to vector<16x1xi32>
    %6 = arith.addi %5, %4 : vector<16x1xi32>
    %c16_i32_5 = arith.constant 16 : i32
    %7 = vector.broadcast %c16_i32_5 : i32 to vector<16x1xi32>
    %8 = arith.cmpi slt, %6, %7 : vector<16x1xi32>
    %c0_i32 = arith.constant 0 : i32
    %9 = vector.broadcast %c0_i32 : i32 to vector<16x1xi32>
    %10 = arith.cmpi ne, %1, %9 : vector<16x1xi32>
    %11 = arith.andi %8, %10 : vector<16x1xi1>
    %cst = arith.constant dense<0xFF800000> : vector<16xf32>
    %12 = vector.multi_reduction <maximumf>, %0, %cst [1] : vector<16x32xf32> to vector<16xf32>
    %13 = vector.shape_cast %12 : vector<16xf32> to vector<16x1xf32>
    %14 = vector.broadcast %2 : vector<1x32xi32> to vector<16x32xi32>
    %15 = vector.broadcast %1 : vector<16x1xi32> to vector<16x32xi32>
    %16 = arith.cmpi eq, %14, %15 : vector<16x32xi32>
    %cst_6 = arith.constant 0.000000e+00 : f32
    %17 = vector.broadcast %cst_6 : f32 to vector<16x32xf32>
    %18 = arith.select %16, %0, %17 : vector<16x32xi1>, vector<16x32xf32>
    %cst_7 = arith.constant dense<0.000000e+00> : vector<16xf32>
    %19 = vector.multi_reduction <add>, %18, %cst_7 [1] : vector<16x32xf32> to vector<16xf32>
    %20 = vector.shape_cast %19 : vector<16xf32> to vector<16x1xf32>
    %21 = vector.broadcast %13 : vector<16x1xf32> to vector<16x32xf32>
    %22 = arith.subf %0, %21 : vector<16x32xf32>
    %23 = math.exp %22 : vector<16x32xf32>
    %cst_8 = arith.constant dense<0.000000e+00> : vector<16xf32>
    %24 = vector.multi_reduction <add>, %23, %cst_8 [1] : vector<16x32xf32> to vector<16xf32>
    %25 = vector.shape_cast %24 : vector<16xf32> to vector<16x1xf32>
    %26 = math.log %25 : vector<16x1xf32>
    %27 = arith.addf %13, %26 : vector<16x1xf32>
    %28 = arith.subf %27, %20 : vector<16x1xf32>
    %cst_9 = arith.constant 0.000000e+00 : f32
    %29 = vector.broadcast %cst_9 : f32 to vector<16x1xf32>
    %30 = arith.select %11, %28, %29 : vector<16x1xi1>, vector<16x1xf32>
    %cst_10 = arith.constant 1.000000e+00 : f32
    %cst_11 = arith.constant 0.000000e+00 : f32
    %31 = vector.broadcast %cst_10 : f32 to vector<16x1xf32>
    %32 = vector.broadcast %cst_11 : f32 to vector<16x1xf32>
    %33 = arith.select %11, %31, %32 : vector<16x1xi1>, vector<16x1xf32>
    %34 = vector.shape_cast %30 : vector<16x1xf32> to vector<1x16x1xf32>
    %cst_12 = arith.constant dense<0.000000e+00> : vector<1xf32>
    %35 = vector.multi_reduction <add>, %34, %cst_12 [1, 2] : vector<1x16x1xf32> to vector<1xf32>
    %36 = vector.shape_cast %35 : vector<1xf32> to vector<1x1x1xf32>
    %37 = vector.extract %36[0, 0, 0] : f32 from vector<1x1x1xf32>
    %38 = vector.shape_cast %33 : vector<16x1xf32> to vector<1x16x1xf32>
    %cst_13 = arith.constant dense<0.000000e+00> : vector<1xf32>
    %39 = vector.multi_reduction <add>, %38, %cst_13 [1, 2] : vector<1x16x1xf32> to vector<1xf32>
    %40 = vector.shape_cast %39 : vector<1xf32> to vector<1x1x1xf32>
    %41 = vector.extract %40[0, 0, 0] : f32 from vector<1x1x1xf32>
    %42 = tpu.iota {dimensions = array<i32: 2>} : vector<1x1x128xi32>
    %c0_i32_14 = arith.constant 0 : i32
    %43 = vector.broadcast %c0_i32_14 : i32 to vector<1x1x128xi32>
    %44 = arith.cmpi eq, %42, %43 : vector<1x1x128xi32>
    %c1_i32 = arith.constant 1 : i32
    %45 = vector.broadcast %c1_i32 : i32 to vector<1x1x128xi32>
    %46 = arith.cmpi eq, %42, %45 : vector<1x1x128xi32>
    %cst_15 = arith.constant 0.000000e+00 : f32
    %47 = vector.broadcast %41 : f32 to vector<1x1x128xf32>
    %48 = vector.broadcast %cst_15 : f32 to vector<1x1x128xf32>
    %49 = arith.select %46, %47, %48 : vector<1x1x128xi1>, vector<1x1x128xf32>
    %50 = vector.broadcast %37 : f32 to vector<1x1x128xf32>
    %51 = arith.select %44, %50, %49 : vector<1x1x128xi1>, vector<1x1x128xf32>
    %c0_16 = arith.constant 0 : index
    %c0_17 = arith.constant 0 : index
    %c0_18 = arith.constant 0 : index
    %52 = vector.load %arg4[%c0_16, %c0_17, %c0_18] : memref<1x1x128xf32, #tpu.memory_space<vmem>>, vector<1x1x128xf32>
    tpu.vector_store %arg4[%c0_16, %c0_17, %c0_18], %51 {strides = array<i32>} : memref<1x1x128xf32, #tpu.memory_space<vmem>>, vector<1x1x128xf32>,
    return
  }
  func.func @transform_0(%arg0: i32) -> (i32, i32) {
    %c0_i32 = arith.constant 0 : i32
    %c0_i32_0 = arith.constant 0 : i32
    %c0_i32_1 = arith.constant 0 : i32
    return %c0_i32, %c0_i32_0 : i32, i32
  }
  func.func @transform_1(%arg0: i32) -> (i32, i32) {
    %c0_i32 = arith.constant 0 : i32
    %c0_i32_0 = arith.constant 0 : i32
    return %arg0, %c0_i32 : i32, i32
  }
  func.func @transform_2(%arg0: i32) -> (i32, i32) {
    %c0_i32 = arith.constant 0 : i32
    %c0_i32_0 = arith.constant 0 : i32
    return %arg0, %c0_i32 : i32, i32
  }
  func.func @transform_3(%arg0: i32) -> (i32, i32, i32) {
    %c0_i32 = arith.constant 0 : i32
    %c0_i32_0 = arith.constant 0 : i32
    %c0_i32_1 = arith.constant 0 : i32
    return %arg0, %c0_i32, %c0_i32_0 : i32, i32, i32
  }
}

</mosaic_0001>

<bundles_post_ra>
// kernel: tpu_custom_call.1
= control target key start
LH: loop header
LB: loop body
LE: loop exit
PB: predicated region body
PF: predicated region fallthrough
CT: control target
= control target key end

     0   :  { %vm33_vm0 = vcmask 261120   ;;  %v175_v3 = vmov 0   ;;  %s236_s0 = inlined_call_operand.vmem [shape: s32[1,32], index: 0, kind: input, shape index: {}]   ;;  %s237_s1 = inlined_call_operand.vmem [shape: f32[16,32], index: 1, kind: input, shape index: {}]   ;;  %s238_s2 = inlined_call_operand.vmem [shape: s32[16,1], index: 2, kind: input, shape index: {}]   ;;  %s239_s3 = inlined_call_operand.hbm [shape: f32[1,1,128], index: 3, kind: output, shape index: {}]  }
   0x1   :  { %v15_v0 = vld [vmem:[%s237_s1] sm:$0xff]  ;;  %138 = vset.pattern.permute.xlu1 %v175_v3  ;;  %139 = vset.pattern.permute.xlu0 %v175_v3 }
   0x2   :  { %v204_v1 = vld [vmem:[%s238_s2] sm:$0xff]  ;;  %v34_v2 = vsel %vm33_vm0, %v15_v0, -inf }
   0x3   :  { %35 = vmax.xlane.f32.xlu0 %v34_v2  ;;  %42 = vperm.xlu1 %138, %v204_v1  }
   0x4   :  { %8 = vsyncpa [#allocation3], 0  ;;  %v16_v4 = vld [vmem:[%s237_s1 + $0x8] sm:$0xff]  ;;  %v140_v7 = vld [vmem:[%s236_s0] ss:$0 sm:$0xff]  ;;  %vm29_vm3 = vcmp.ne.s32.totalorder %v204_v1, 0  ;;  %v106_v61 = vlaneseq }
   0x5   :  { %v37_v5 = vsel %vm33_vm0, %v16_v4, -inf  ;;  %v18_v6 = vld [vmem:[%s238_s2 + $0x8] sm:$0xff]  ;;  %v176_v24 = vmov 0.0   ;;  %vm81_vm5 = vcmask 7168   ;;  %s177_s0 = smov [#allocation2]   ;;  %s122_s24 = sshll.u32 %s239_s3, 4  ;;  %s123_s24 = int_to_ptr.hbm [resolvable:$true] %s122_s24 }
   0x6   :  { %vm30_vm4 = vcmp.ne.s32.totalorder %v18_v6, 0  ;;  %v79_v25 = vsel %vm29_vm3, 1.0, %v176_v24  ;;  %v107_v62 = vand.u32 127, %v106_v61  ;;  %s120_s1 = sshll.u32 %s177_s0, 4  ;;  %s121_s1 = int_to_ptr.vmem [resolvable:$true] %s120_s1 }
   0x7   :  { %v80_v26 = vsel %vm30_vm4, 1.0, %v176_v24  ;;  %v94_v27 = vsel %vm81_vm5, %v79_v25, 0.0 }
   0x8   :  { %v95_v28 = vsel %vm81_vm5, %v80_v26, 0.0  ;;  %vm109_vm6 = vcmp.eq.s32.totalorder %v107_v62, 1  ;;  %vm108_vm7 = vcmp.eq.s32.totalorder %v107_v62, 0 }
   0x9   :  { %v96_v29 = vadd.f32 %v95_v28, %v94_v27 }
   0xb   :  { %38 = vmax.xlane.f32.xlu0 %v37_v5  ;;  %45 = vperm.xlu1 %138, %v18_v6  }
  0x75   :  { %v43_v8 = vpop.permute.xlu1 %42 }
  0x76   :  { %v36_v9 = vpop.xlane.xlu0 %35  ;;  %vm47_vm1 = vcmp.eq.s32.totalorder %v140_v7, %v43_v8 }
  0x77   :  { %v57_v10 = vsub.f32 %v15_v0, %v36_v9  ;;  %v49_v11 = vsel %vm47_vm1, %v15_v0, 0.0 }
  0x78   :  { %v51_v12 = vsel %vm33_vm0, %v49_v11, 0.0 }
  0x79   :  { %v59_v13 = vmul.f32 1.442695, %v57_v10  ;;  %52 = vadd.xlane.f32.xlu0 %v51_v12 }
  0x7b   :  { %141 = vpow2.f32 %v59_v13 }
  0x7d   :  { %v46_v14 = vpop.permute.xlu1 %45 }
  0x7e   :  { %v39_v15 = vpop.xlane.xlu0 %38  ;;  %vm48_vm2 = vcmp.eq.s32.totalorder %v140_v7, %v46_v14 }
  0x7f   :  { %v58_v16 = vsub.f32 %v16_v4, %v39_v15  ;;  %v50_v17 = vsel %vm48_vm2, %v16_v4, 0.0 }
  0x80   :  { %v54_v18 = vsel %vm33_vm0, %v50_v17, 0.0 }
  0x81   :  { %v142_v19 = vpop.eup %141  ;;  %v61_v20 = vmul.f32 1.442695, %v58_v16  ;;  %55 = vadd.xlane.f32.xlu1 %v54_v18  ;;  %97 = vadd.xlane.f32.xlu0 %v96_v29 }
  0x82   :  { %v63_v21 = vsel %vm33_vm0, %v142_v19, 0.0 }
  0x83   :  { %143 = vpow2.f32 %v61_v20  ;;  %64 = vadd.xlane.f32.xlu2 %v63_v21 }
  0x89   :  { %v144_v22 = vpop.eup %143 }
  0x8a   :  { %v66_v23 = vsel %vm33_vm0, %v144_v22, 0.0 }
  0x8b   :  { %67 = vadd.xlane.f32.xlu2 %v66_v23 }
  0xec   :  { %v53_v35 = vpop.xlane.xlu0 %52 }
  0xf4   :  { %v56_v40 = vpop.xlane.xlu1 %55  ;;  %v98_v47 = vpop.xlane.xlu0 %97 }
  0xf5   :  { %v99_v48 = vrot.slane %v98_v47, 4 }
  0xf6   :  { %v65_v30 = vpop.xlane.xlu2 %64 }
  0xf7   :  { %145 = vlog2.f32 %v65_v30  ;;  %v100_v49 = vadd.f32 %v99_v48, %v98_v47 }
  0xf9   :  { %v101_v50 = vrot.slane %v100_v49, 2 }
  0xfb   :  { %v102_v54 = vadd.f32 %v101_v50, %v100_v49 }
  0xfd   :  { %v146_v31 = vpop.eup %145  ;;  %v103_v57 = vrot.slane %v102_v54, 1 }
  0xfe   :  { %v70_v32 = vmul.f32 0.6931472, %v146_v31  ;;  %v68_v33 = vpop.xlane.xlu2 %67 }
  0xff   :  { %147 = vlog2.f32 %v68_v33  ;;  %v104_v60 = vadd.f32 %v103_v57, %v102_v54 }
 0x100   :  { %v73_v34 = vadd.f32 %v70_v32, %v36_v9 }
 0x102   :  { %v75_v38 = vsub.f32 %v73_v34, %v53_v35 }
 0x104   :  { %v77_v42 = vsel %vm29_vm3, %v75_v38, 0.0 }
 0x105   :  { %v148_v36 = vpop.eup %147  ;;  %v82_v44 = vsel %vm81_vm5, %v77_v42, 0.0 }
 0x106   :  { %v72_v37 = vmul.f32 0.6931472, %v148_v36 }
 0x108   :  { %v74_v39 = vadd.f32 %v72_v37, %v39_v15 }
 0x10a   :  { %v76_v41 = vsub.f32 %v74_v39, %v56_v40 }
 0x10c   :  { %v78_v43 = vsel %vm30_vm4, %v76_v41, 0.0 }
 0x10d   :  { %v83_v45 = vsel %vm81_vm5, %v78_v43, 0.0 }
 0x10e   :  { %v84_v46 = vadd.f32 %v83_v45, %v82_v44 }
 0x110   :  { %85 = vadd.xlane.f32.xlu2 %v84_v46 }
 0x183   :  { %v86_v51 = vpop.xlane.xlu2 %85 }
 0x184   :  { %v87_v52 = vrot.slane %v86_v51, 4 }
 0x186   :  { %v88_v53 = vadd.f32 %v87_v52, %v86_v51 }
 0x188   :  { %v89_v55 = vrot.slane %v88_v53, 2 }
 0x18a   :  { %v90_v56 = vadd.f32 %v89_v55, %v88_v53 }
 0x18c   :  { %v91_v58 = vrot.slane %v90_v56, 1 }
 0x18e   :  { %v92_v59 = vadd.f32 %v91_v58, %v90_v56 }
 0x190   :  { %131 = vpush %v92_v59 }
 0x191   :  { %133 = vpush %v104_v60 }
 0x1c1   :  { %s132_s2 = spop %131 }
 0x1c2   :  { %v112_v63 = vstv %s132_s2  ;;  %s134_s25 = spop %133 }
 0x1c3   :  { %v110_v0 = vstv %s134_s25 }
 0x1c4   :  { %v111_v1 = vsel %vm109_vm6, %v110_v0, 0.0 }
 0x1c5   :  { %v113_v2 = vsel %vm108_vm7, %v112_v63, %v111_v1 }
 0x1c6   :  { %114 = vst [vmem:[#allocation2] sm:$0x1] %v113_v2 }
 0x1c7   :  { %125 = dma.vmem_to_hbm [thread:$0]  %s121_s1, 16, %s123_s24, [#allocation3]  }
 0x1c8   :  { %173 = dma.done.wait [#allocation3], 16  }
 0x1c9   :  { %174 = vsyncadd [#allocation3], 4294967280 }
 0x1ca   :  { %130 = vsyncpa [#allocation3], 1 }

</bundles_post_ra>
